<compile_context>
chip_gen: v6e
topology: v6e:2x2x1
jax: 0.10.0
libtpu: 0.0.40
codegen_flags: <defaults>
</compile_context>

<pallas_src>
import functools

import jax
import jax.numpy as jnp
from jax.experimental import pallas as pl
from jax.experimental.pallas import tpu as pltpu

NEG_SLOPE = 0.2  # nn.LeakyReLU(0.2)


def _leaky_relu(x):
    return jnp.where(x >= 0, x, NEG_SLOPE * x)


def _round_up(x, m):
    return (x + m - 1) // m * m


# --------------------------------------------------------------------------
# Fused kernel: backbone (residual MLP) + outer activation + merged heads
# --------------------------------------------------------------------------
def _make_fused_kernel(dims, mxu_dtype):
    """dims = (v_dim, *n_hiddens_lst); returns the kernel body (closure)."""
    L = len(dims) - 1

    def kernel(x_ref, *refs):
        # refs = (w0, b0, ..., w_{L-1}, b_{L-1}, w_heads, b_heads, heads_out)
        wb_refs = refs[: 2 * L]
        wh_ref = refs[2 * L]
        bh_ref = refs[2 * L + 1]
        heads_ref = refs[2 * L + 2]

        h = x_ref[...].astype(jnp.float32)
        for i in range(L):
            w = wb_refs[2 * i][...]            # already mxu_dtype (pre-cast in wrapper)
            b = wb_refs[2 * i + 1][...]        # f32
            y = jnp.dot(h.astype(mxu_dtype), w,
                        preferred_element_type=jnp.float32) + b
            if i < L - 1:
                y = _leaky_relu(y)             # hidden activation
            if dims[i] == dims[i + 1]:
                y = y + h                      # identity residual
            h = y

        m = _leaky_relu(h)                     # outer self.af(main(v))

        heads = jnp.dot(m.astype(mxu_dtype), wh_ref[...],
                        preferred_element_type=jnp.float32) + bh_ref[...]
        heads_ref[...] = heads.astype(heads_ref.dtype)

    return kernel


# --------------------------------------------------------------------------
# Wrapper
# --------------------------------------------------------------------------
def mlp_residual_param_net_forward(v, params, dims, h_dim,
                                   mxu_dtype=jnp.bfloat16, max_tile_m=1024):
    """v: (B, v_dim) f32 -> (mean, log_std), each (B, h_dim) f32."""
    dims = tuple(dims)
    L = len(dims) - 1
    B, v_dim = v.shape
    assert v_dim == dims[0]

    out_w = params["wh"].shape[1]              # lane-padded head width (mult of 128)
    assert out_w % 128 == 0 and out_w >= 2 * h_dim

    # M-tile: as large as is useful (cheap in VMEM at these widths), but keep
    # grid_m >= 2 whenever B >= 16 so v7x's two TensorCores both get work.
    tile_m = min(max_tile_m, _round_up(max(B, 1), 8))
    if B >= 16:
        tile_m = min(tile_m, _round_up(pl.cdiv(B, 2), 8))
    grid_m = pl.cdiv(B, tile_m)
    b_pad = grid_m * tile_m                    # padded OUTPUT rows only (no input pad)

    kernel = _make_fused_kernel(dims, mxu_dtype)

    x = v.astype(jnp.float32)                  # no HBM padding copy of the input
    args = [x]
    in_specs = [pl.BlockSpec((tile_m, dims[0]), lambda i: (i, 0))]
    # Weights / biases: full-extent blocks, constant index_map -> loaded once,
    # resident across the whole M grid.
    for layer in range(L):
        w = params["ws"][layer]                # (d_in, d_out), mxu_dtype
        b = params["bs"][layer]                # (1, d_out), f32
        args += [w, b]
        in_specs += [
            pl.BlockSpec(w.shape, lambda i: (0, 0)),
            pl.BlockSpec(b.shape, lambda i: (0, 0)),
        ]
    args += [params["wh"], params["bh"]]       # (n_features, out_w), (1, out_w)
    in_specs += [
        pl.BlockSpec(params["wh"].shape, lambda i: (0, 0)),
        pl.BlockSpec(params["bh"].shape, lambda i: (0, 0)),
    ]

    heads = pl.pallas_call(
        kernel,
        out_shape=jax.ShapeDtypeStruct((b_pad, out_w), jnp.float32),
        grid_spec=pltpu.PrefetchScalarGridSpec(
            num_scalar_prefetch=0,
            grid=(grid_m,),
            in_specs=in_specs,
            out_specs=pl.BlockSpec((tile_m, out_w), lambda i: (i, 0)),
        ),
        compiler_params=pltpu.CompilerParams(
            dimension_semantics=("parallel",)),
    )(*args)

    mean = heads[:B, :h_dim]
    log_std = heads[:B, h_dim:2 * h_dim]
    return mean, log_std


# --------------------------------------------------------------------------
# Parameter setup (PyTorch-layout params + kernel-layout conversion)
# --------------------------------------------------------------------------
def init_torch_params(key, v_dim, h_dim, n_hiddens_lst, scale=0.05):
    """PyTorch-style params: Linear weights are (out, in)."""
    dims = (v_dim,) + tuple(n_hiddens_lst)
    L = len(dims) - 1
    keys = jax.random.split(key, 2 * L + 4)

    Ws, Bs = [], []
    for i in range(L):
        Ws.append(scale * jax.random.normal(keys[2 * i], (dims[i + 1], dims[i]),
                                            jnp.float32))
        Bs.append(scale * jax.random.normal(keys[2 * i + 1], (dims[i + 1],),
                                            jnp.float32))
    n_features = dims[-1]
    wm = scale * jax.random.normal(keys[2 * L], (h_dim, n_features), jnp.float32)
    bm = scale * jax.random.normal(keys[2 * L + 1], (h_dim,), jnp.float32)
    wls = scale * jax.random.normal(keys[2 * L + 2], (h_dim, n_features), jnp.float32)
    bls = scale * jax.random.normal(keys[2 * L + 3], (h_dim,), jnp.float32)
    return dict(Ws=Ws, Bs=Bs, wm=wm, bm=bm, wls=wls, bls=bls), dims


def prepare_kernel_params(tp, dims, h_dim, mxu_dtype=jnp.bfloat16):
    """Transpose to (in, out), pre-cast weights to mxu_dtype, merge + lane-pad heads."""
    L = len(dims) - 1
    ws = [tp["Ws"][i].T.astype(mxu_dtype) for i in range(L)]          # (d_in, d_out)
    bs = [tp["Bs"][i].reshape(1, -1).astype(jnp.float32) for i in range(L)]

    wh = jnp.concatenate([tp["wm"].T, tp["wls"].T], axis=1)           # (n_feat, 2*h_dim)
    bh = jnp.concatenate([tp["bm"], tp["bls"]], axis=0)               # (2*h_dim,)
    out_w = _round_up(2 * h_dim, 128)                                 # lane-dense output
    wh = jnp.pad(wh, ((0, 0), (0, out_w - 2 * h_dim))).astype(mxu_dtype)
    bh = jnp.pad(bh, (0, out_w - 2 * h_dim)).reshape(1, -1).astype(jnp.float32)
    return dict(ws=ws, bs=bs, wh=wh, bh=bh)


def reference_forward(v, tp, dims):
    """Pure-JAX f32 reference of the same semantics (for tolerance check)."""
    L = len(dims) - 1
    h = v
    for i in range(L):
        y = h @ tp["Ws"][i].T + tp["Bs"][i]
        if i < L - 1:
            y = _leaky_relu(y)
        if dims[i] == dims[i + 1]:
            y = y + h
        h = y
    m = _leaky_relu(h)
    mean = m @ tp["wm"].T + tp["bm"]
    log_std = m @ tp["wls"].T + tp["bls"]
    return mean, log_std


# --------------------------------------------------------------------------
if __name__ == "__main__":
    v_dim, h_dim = 16, 16
    n_hiddens_lst = [32, 32, 32]

    key = jax.random.PRNGKey(0)
    kp, kx1, kx2 = jax.random.split(key, 3)
    torch_params, dims = init_torch_params(kp, v_dim, h_dim, n_hiddens_lst)
    kparams = prepare_kernel_params(torch_params, dims, h_dim,
                                    mxu_dtype=jnp.bfloat16)

    fwd = jax.jit(functools.partial(mlp_residual_param_net_forward,
                                    dims=dims, h_dim=h_dim,
                                    mxu_dtype=jnp.bfloat16))

    # B=2 (single block) and B=200 (multi-block grid + partial final block).
    for batch, kx in ((2, kx1), (200, kx2)):
        v = jax.random.normal(kx, (batch, v_dim), jnp.float32)
        mean, log_std = fwd(v, kparams)
        jax.block_until_ready((mean, log_std))

        assert mean.shape == (batch, h_dim) and log_std.shape == (batch, h_dim)
        assert mean.dtype == jnp.float32 and log_std.dtype == jnp.float32

        ref_mean, ref_log_std = reference_forward(v, torch_params, dims)
        assert float(jnp.max(jnp.abs(mean - ref_mean))) < 5e-2
        assert float(jnp.max(jnp.abs(log_std - ref_log_std))) < 5e-2

    print("KERNEL_OK")
</pallas_src>

<mosaic_0001>
module attributes {stable_mosaic.version = 11 : i64} {
  func.func @kernel(%arg0: i32, %arg1: memref<8x16xf32, #tpu.memory_space<vmem>>, %arg2: memref<16x32xbf16, #tpu.memory_space<vmem>>, %arg3: memref<1x32xf32, #tpu.memory_space<vmem>>, %arg4: memref<32x32xbf16, #tpu.memory_space<vmem>>, %arg5: memref<1x32xf32, #tpu.memory_space<vmem>>, %arg6: memref<32x32xbf16, #tpu.memory_space<vmem>>, %arg7: memref<1x32xf32, #tpu.memory_space<vmem>>, %arg8: memref<32x128xbf16, #tpu.memory_space<vmem>>, %arg9: memref<1x128xf32, #tpu.memory_space<vmem>>, %arg10: memref<8x128xf32, #tpu.memory_space<vmem>>) attributes {dimension_semantics = [#tpu.dimension_semantics<parallel>], iteration_bounds = array<i64: 1>, scalar_prefetch = 0 : i64, scratch_operands = 0 : i64, tpu.core_type = #tpu.core_type<tc>, window_params = [{transform_indices = @transform_0, window_bounds = array<i64: 8, 16>}, {pipeline_mode = #tpu.pipeline_mode<synchronous>, transform_indices = @transform_1, window_bounds = array<i64: 16, 32>}, {pipeline_mode = #tpu.pipeline_mode<synchronous>, transform_indices = @transform_2, window_bounds = array<i64: 1, 32>}, {pipeline_mode = #tpu.pipeline_mode<synchronous>, transform_indices = @transform_3, window_bounds = array<i64: 32, 32>}, {pipeline_mode = #tpu.pipeline_mode<synchronous>, transform_indices = @transform_4, window_bounds = array<i64: 1, 32>}, {pipeline_mode = #tpu.pipeline_mode<synchronous>, transform_indices = @transform_5, window_bounds = array<i64: 32, 32>}, {pipeline_mode = #tpu.pipeline_mode<synchronous>, transform_indices = @transform_6, window_bounds = array<i64: 1, 32>}, {pipeline_mode = #tpu.pipeline_mode<synchronous>, transform_indices = @transform_7, window_bounds = array<i64: 32, 128>}, {pipeline_mode = #tpu.pipeline_mode<synchronous>, transform_indices = @transform_8, window_bounds = array<i64: 1, 128>}, {transform_indices = @transform_9, window_bounds = array<i64: 8, 128>}]} {
    %c0 = arith.constant 0 : index
    %c0_0 = arith.constant 0 : index
    %0 = vector.load %arg1[%c0, %c0_0] : memref<8x16xf32, #tpu.memory_space<vmem>>, vector<8x16xf32>
    %c0_1 = arith.constant 0 : index
    %c0_2 = arith.constant 0 : index
    %1 = vector.load %arg2[%c0_1, %c0_2] : memref<16x32xbf16, #tpu.memory_space<vmem>>, vector<16x32xbf16>
    %c0_3 = arith.constant 0 : index
    %c0_4 = arith.constant 0 : index
    %2 = vector.load %arg3[%c0_3, %c0_4] : memref<1x32xf32, #tpu.memory_space<vmem>>, vector<1x32xf32>
    %3 = arith.truncf %0 : vector<8x16xf32> to vector<8x16xbf16>
    %cst = arith.constant dense<0.000000e+00> : vector<8x32xf32>
    %4 = tpu.matmul %3, %1, %cst {dimension_numbers = #tpu.dot_dimension_numbers<[1], [0], [0], [1], [0, 0, 1, 1], [], []>} : vector<8x16xbf16>, vector<16x32xbf16>, vector<8x32xf32> -> vector<8x32xf32>
    %5 = vector.broadcast %2 : vector<1x32xf32> to vector<8x32xf32>
    %6 = arith.addf %4, %5 : vector<8x32xf32>
    %cst_5 = arith.constant 0.000000e+00 : f32
    %7 = vector.broadcast %cst_5 : f32 to vector<8x32xf32>
    %8 = arith.cmpf oge, %6, %7 : vector<8x32xf32>
    %cst_6 = arith.constant 2.000000e-01 : f32
    %9 = vector.broadcast %cst_6 : f32 to vector<8x32xf32>
    %10 = arith.mulf %9, %6 : vector<8x32xf32>
    %11 = arith.select %8, %6, %10 : vector<8x32xi1>, vector<8x32xf32>
    %c0_7 = arith.constant 0 : index
    %c0_8 = arith.constant 0 : index
    %12 = vector.load %arg4[%c0_7, %c0_8] : memref<32x32xbf16, #tpu.memory_space<vmem>>, vector<32x32xbf16>
    %c0_9 = arith.constant 0 : index
    %c0_10 = arith.constant 0 : index
    %13 = vector.load %arg5[%c0_9, %c0_10] : memref<1x32xf32, #tpu.memory_space<vmem>>, vector<1x32xf32>
    %14 = arith.truncf %11 : vector<8x32xf32> to vector<8x32xbf16>
    %cst_11 = arith.constant dense<0.000000e+00> : vector<8x32xf32>
    %15 = tpu.matmul %14, %12, %cst_11 {dimension_numbers = #tpu.dot_dimension_numbers<[1], [0], [0], [1], [0, 0, 1, 1], [], []>} : vector<8x32xbf16>, vector<32x32xbf16>, vector<8x32xf32> -> vector<8x32xf32>
    %16 = vector.broadcast %13 : vector<1x32xf32> to vector<8x32xf32>
    %17 = arith.addf %15, %16 : vector<8x32xf32>
    %cst_12 = arith.constant 0.000000e+00 : f32
    %18 = vector.broadcast %cst_12 : f32 to vector<8x32xf32>
    %19 = arith.cmpf oge, %17, %18 : vector<8x32xf32>
    %cst_13 = arith.constant 2.000000e-01 : f32
    %20 = vector.broadcast %cst_13 : f32 to vector<8x32xf32>
    %21 = arith.mulf %20, %17 : vector<8x32xf32>
    %22 = arith.select %19, %17, %21 : vector<8x32xi1>, vector<8x32xf32>
    %23 = arith.addf %22, %11 : vector<8x32xf32>
    %c0_14 = arith.constant 0 : index
    %c0_15 = arith.constant 0 : index
    %24 = vector.load %arg6[%c0_14, %c0_15] : memref<32x32xbf16, #tpu.memory_space<vmem>>, vector<32x32xbf16>
    %c0_16 = arith.constant 0 : index
    %c0_17 = arith.constant 0 : index
    %25 = vector.load %arg7[%c0_16, %c0_17] : memref<1x32xf32, #tpu.memory_space<vmem>>, vector<1x32xf32>
    %26 = arith.truncf %23 : vector<8x32xf32> to vector<8x32xbf16>
    %cst_18 = arith.constant dense<0.000000e+00> : vector<8x32xf32>
    %27 = tpu.matmul %26, %24, %cst_18 {dimension_numbers = #tpu.dot_dimension_numbers<[1], [0], [0], [1], [0, 0, 1, 1], [], []>} : vector<8x32xbf16>, vector<32x32xbf16>, vector<8x32xf32> -> vector<8x32xf32>
    %28 = vector.broadcast %25 : vector<1x32xf32> to vector<8x32xf32>
    %29 = arith.addf %27, %28 : vector<8x32xf32>
    %30 = arith.addf %29, %23 : vector<8x32xf32>
    %cst_19 = arith.constant 0.000000e+00 : f32
    %31 = vector.broadcast %cst_19 : f32 to vector<8x32xf32>
    %32 = arith.cmpf oge, %30, %31 : vector<8x32xf32>
    %cst_20 = arith.constant 2.000000e-01 : f32
    %33 = vector.broadcast %cst_20 : f32 to vector<8x32xf32>
    %34 = arith.mulf %33, %30 : vector<8x32xf32>
    %35 = arith.select %32, %30, %34 : vector<8x32xi1>, vector<8x32xf32>
    %36 = arith.truncf %35 : vector<8x32xf32> to vector<8x32xbf16>
    %c0_21 = arith.constant 0 : index
    %c0_22 = arith.constant 0 : index
    %37 = vector.load %arg8[%c0_21, %c0_22] : memref<32x128xbf16, #tpu.memory_space<vmem>>, vector<32x128xbf16>
    %cst_23 = arith.constant dense<0.000000e+00> : vector<8x128xf32>
    %38 = tpu.matmul %36, %37, %cst_23 {dimension_numbers = #tpu.dot_dimension_numbers<[1], [0], [0], [1], [0, 0, 1, 1], [], []>} : vector<8x32xbf16>, vector<32x128xbf16>, vector<8x128xf32> -> vector<8x128xf32>
    %c0_24 = arith.constant 0 : index
    %c0_25 = arith.constant 0 : index
    %39 = vector.load %arg9[%c0_24, %c0_25] : memref<1x128xf32, #tpu.memory_space<vmem>>, vector<1x128xf32>
    %40 = vector.broadcast %39 : vector<1x128xf32> to vector<8x128xf32>
    %41 = arith.addf %38, %40 : vector<8x128xf32>
    %c0_26 = arith.constant 0 : index
    %c0_27 = arith.constant 0 : index
    %42 = vector.load %arg10[%c0_26, %c0_27] : memref<8x128xf32, #tpu.memory_space<vmem>>, vector<8x128xf32>
    tpu.vector_store %arg10[%c0_26, %c0_27], %41 {strides = array<i32>} : memref<8x128xf32, #tpu.memory_space<vmem>>, vector<8x128xf32>,
    return
  }
  func.func @transform_0(%arg0: i32) -> (i32, i32) {
    %c0_i32 = arith.constant 0 : i32
    %c0_i32_0 = arith.constant 0 : i32
    return %arg0, %c0_i32 : i32, i32
  }
  func.func @transform_1(%arg0: i32) -> (i32, i32) {
    %c0_i32 = arith.constant 0 : i32
    %c0_i32_0 = arith.constant 0 : i32
    %c0_i32_1 = arith.constant 0 : i32
    return %c0_i32, %c0_i32_0 : i32, i32
  }
  func.func @transform_2(%arg0: i32) -> (i32, i32) {
    %c0_i32 = arith.constant 0 : i32
    %c0_i32_0 = arith.constant 0 : i32
    %c0_i32_1 = arith.constant 0 : i32
    return %c0_i32, %c0_i32_0 : i32, i32
  }
  func.func @transform_3(%arg0: i32) -> (i32, i32) {
    %c0_i32 = arith.constant 0 : i32
    %c0_i32_0 = arith.constant 0 : i32
    %c0_i32_1 = arith.constant 0 : i32
    return %c0_i32, %c0_i32_0 : i32, i32
  }
  func.func @transform_4(%arg0: i32) -> (i32, i32) {
    %c0_i32 = arith.constant 0 : i32
    %c0_i32_0 = arith.constant 0 : i32
    %c0_i32_1 = arith.constant 0 : i32
    return %c0_i32, %c0_i32_0 : i32, i32
  }
  func.func @transform_5(%arg0: i32) -> (i32, i32) {
    %c0_i32 = arith.constant 0 : i32
    %c0_i32_0 = arith.constant 0 : i32
    %c0_i32_1 = arith.constant 0 : i32
    return %c0_i32, %c0_i32_0 : i32, i32
  }
  func.func @transform_6(%arg0: i32) -> (i32, i32) {
    %c0_i32 = arith.constant 0 : i32
    %c0_i32_0 = arith.constant 0 : i32
    %c0_i32_1 = arith.constant 0 : i32
    return %c0_i32, %c0_i32_0 : i32, i32
  }
  func.func @transform_7(%arg0: i32) -> (i32, i32) {
    %c0_i32 = arith.constant 0 : i32
    %c0_i32_0 = arith.constant 0 : i32
    %c0_i32_1 = arith.constant 0 : i32
    return %c0_i32, %c0_i32_0 : i32, i32
  }
  func.func @transform_8(%arg0: i32) -> (i32, i32) {
    %c0_i32 = arith.constant 0 : i32
    %c0_i32_0 = arith.constant 0 : i32
    %c0_i32_1 = arith.constant 0 : i32
    return %c0_i32, %c0_i32_0 : i32, i32
  }
  func.func @transform_9(%arg0: i32) -> (i32, i32) {
    %c0_i32 = arith.constant 0 : i32
    %c0_i32_0 = arith.constant 0 : i32
    return %arg0, %c0_i32 : i32, i32
  }
}

</mosaic_0001>

<bundles_post_ra>
// kernel: mlp_residual_param_net_forward.1
= control target key start
LH: loop header
LB: loop body
LE: loop exit
PB: predicated region body
PF: predicated region fallthrough
CT: control target
= control target key end

     0   :  { %14 = vsyncpa [#allocation3], 0  ;;  %s705_s0 = inlined_call_operand.hbm [shape: f32[2,16], index: 0, kind: input, shape index: {}]   ;;  %s706_s1 = inlined_call_operand.vmem [shape: bf16[16,32], index: 1, kind: input, shape index: {}]   ;;  %s707_s2 = inlined_call_operand.vmem [shape: f32[1,32], index: 2, kind: input, shape index: {}]   ;;  %s708_s3 = inlined_call_operand.hbm [shape: bf16[32,32], index: 3, kind: input, shape index: {}]   ;;  %s709_s4 = inlined_call_operand.vmem [shape: f32[1,32], index: 4, kind: input, shape index: {}]   ;;  %s710_s5 = inlined_call_operand.hbm [shape: bf16[32,32], index: 5, kind: input, shape index: {}]   ;;  %s711_s6 = inlined_call_operand.hbm [shape: f32[1,32], index: 6, kind: input, shape index: {}]   ;;  %s712_s7 = inlined_call_operand.hbm [shape: bf16[32,128], index: 7, kind: input, shape index: {}]   ;;  %s713_s8 = inlined_call_operand.hbm [shape: f32[1,128], index: 8, kind: input, shape index: {}]   ;;  %s714_s9 = inlined_call_operand.vmem [shape: f32[8,128], index: 9, kind: output, shape index: {}]  }
   0x1   :  { %15 = vsyncpa [#allocation5], 0 }
   0x2   :  { %16 = vsyncpa [#allocation8], 0 }
   0x3   :  { %17 = vsyncpa [#allocation11], 0 }
   0x4   :  { %22 = vsyncadd [#allocation3], 96  ;;  %s597_s30 = smov [#allocation4]  }
   0x5   :  { %s39_s10 = sshll.u32 %s597_s30, 4  ;;  %s40_s10 = int_to_ptr.vmem [resolvable:$true] %s39_s10 }
   0x6   :  { %s477_s11 = scalar_lea.vmem %s40_s10, 256  ;;  %p482_p1 = scmp.lt.s32.totalorder %s40_s10, %s40_s10 }
   0x7   :  { %p478_p0 = scmp.ne.s32.totalorder %s40_s10, %s477_s11  ;;  %p483_p2 = scmp.lt.s32.totalorder %s477_s11, %s477_s11 }
   0x9   :  { %p484_p3 = por %p483_p2, %p482_p1 }
   0xb   :  { %p485_p4 = pnand %p484_p3, %p478_p0 }
   0xd   :  { %488 = shalt.err (!%p485_p4)
}
   0xe   :  { %s598_s12 = smov 64   ;;  %s599_s13 = smov 4  }
   0xf   :  { %45 = dma.hbm_to_vmem [thread:$0]  %s708_s3, 256, %s40_s10, [#allocation5], %s598_s12, %s598_s12, %s599_s13  }
  0x10   :  { %s600_s16 = smov [#allocation7]   ;;  %s601_s18 = smov [#allocation2]  }
  0x11   :  { %s66_s17 = sshll.u32 %s600_s16, 4  ;;  %s23_s19 = sshll.u32 %s601_s18, 4  ;;  %s67_s17 = int_to_ptr.vmem [resolvable:$true] %s66_s17  ;;  %s24_s19 = int_to_ptr.vmem [resolvable:$true] %s23_s19 }
  0x12   :  { %s497_s20 = scalar_lea.vmem %s67_s17, 16  ;;  %s501_s21 = scalar_lea.vmem %s67_s17, 32 }
  0x13   :  { %p498_p5 = scmp.ne.s32.totalorder %s67_s17, %s497_s20  ;;  %p502_p6 = scmp.lt.s32.totalorder %s67_s17, %s67_s17 }
  0x14   :  { %p503_p7 = scmp.lt.s32.totalorder %s501_s21, %s497_s20 }
  0x16   :  { %p504_p8 = por %p503_p7, %p502_p6 }
  0x18   :  { %p505_p9 = pnand %p504_p8, %p498_p5 }
  0x1a   :  { %508 = shalt.err (!%p505_p9)
}
  0x1b   :  { %69 = dma.hbm_to_vmem [thread:$0]  %s711_s6, 16, %s67_s17, [#allocation8]  }
  0x1c   :  { %s517_s24 = scalar_lea.vmem %s24_s19, 32  ;;  %s521_s3 = scalar_lea.vmem %s24_s19, 128 }
  0x1d   :  { %p518_p10 = scmp.ne.s32.totalorder %s24_s19, %s517_s24  ;;  %p522_p11 = scmp.lt.s32.totalorder %s24_s19, %s24_s19 }
  0x1e   :  { %p523_p12 = scmp.lt.s32.totalorder %s521_s3, %s517_s24 }
  0x20   :  { %p524_p13 = por %p523_p12, %p522_p11 }
  0x22   :  { %p525_p0 = pnand %p524_p13, %p518_p10 }
  0x24   :  { %528 = shalt.err (!%p525_p0)
}
  0x25   :  { %s602_s25 = smov 32   ;;  %s603_s26 = smov 2  }
  0x26   :  { %29 = dma.hbm_to_vmem [thread:$0]  %s705_s0, 32, %s24_s19, [#allocation3], %s602_s25, %s602_s25, %s603_s26  }
  0x27   :  { %s604_s29 = smov [#allocation6]   ;;  %s605_s10 = smov [#allocation9]  }
  0x28   :  { %s53_s30 = sshll.u32 %s604_s29, 4  ;;  %s75_s6 = sshll.u32 %s605_s10, 4  ;;  %s54_s30 = int_to_ptr.vmem [resolvable:$true] %s53_s30  ;;  %s76_s6 = int_to_ptr.vmem [resolvable:$true] %s75_s6 }
  0x29   :  { %s537_s11 = scalar_lea.vmem %s54_s30, 256  ;;  %p542_p2 = scmp.lt.s32.totalorder %s54_s30, %s54_s30 }
  0x2a   :  { %p538_p1 = scmp.ne.s32.totalorder %s54_s30, %s537_s11  ;;  %p543_p3 = scmp.lt.s32.totalorder %s537_s11, %s537_s11 }
  0x2c   :  { %p544_p4 = por %p543_p3, %p542_p2 }
  0x2e   :  { %p545_p5 = pnand %p544_p4, %p538_p1 }
  0x30   :  { %548 = shalt.err (!%p545_p5)
}
  0x31   :  { %59 = dma.hbm_to_vmem [thread:$0]  %s710_s5, 256, %s54_s30, [#allocation5], %s598_s12, %s598_s12, %s599_s13  }
  0x32   :  { %s557_s0 = scalar_lea.vmem %s76_s6, 256  ;;  %p562_p7 = scmp.lt.s32.totalorder %s76_s6, %s76_s6 }
  0x33   :  { %p558_p6 = scmp.ne.s32.totalorder %s76_s6, %s557_s0  ;;  %p563_p8 = scmp.lt.s32.totalorder %s557_s0, %s557_s0 }
  0x35   :  { %p564_p9 = por %p563_p8, %p562_p7 }
  0x37   :  { %p565_p10 = pnand %p564_p9, %p558_p6 }
  0x39   :  { %568 = shalt.err (!%p565_p10)
}
  0x3a   :  { %81 = dma.hbm_to_vmem [thread:$0]  %s712_s7, 256, %s76_s6, [#allocation8], %s598_s12, %s598_s12, %s599_s13  }
  0x3b   :  { %s606_s18 = smov [#allocation10]  }
  0x3c   :  { %s88_s19 = sshll.u32 %s606_s18, 4  ;;  %s89_s19 = int_to_ptr.vmem [resolvable:$true] %s88_s19 }
  0x3d   :  { %s577_s20 = scalar_lea.vmem %s89_s19, 16  ;;  %s581_s5 = scalar_lea.vmem %s89_s19, 32 }
  0x3e   :  { %p578_p11 = scmp.ne.s32.totalorder %s89_s19, %s577_s20  ;;  %p582_p12 = scmp.lt.s32.totalorder %s89_s19, %s89_s19 }
  0x3f   :  { %p583_p13 = scmp.lt.s32.totalorder %s581_s5, %s577_s20 }
  0x41   :  { %p584_p0 = por %p583_p13, %p582_p12 }
  0x43   :  { %p585_p1 = pnand %p584_p0, %p578_p11 }
  0x45   :  { %588 = shalt.err (!%p585_p1)
}
  0x46   :  { %91 = dma.hbm_to_vmem [thread:$0]  %s713_s8, 16, %s89_s19, [#allocation11]  }
  0x47   :  { %589 = dma.done.wait [#allocation3], 128  }
  0x48   :  { %590 = vsyncadd [#allocation3], 4294967168 }
  0x49   :  { %591 = dma.done.wait [#allocation5], 512  }
  0x4a   :  { %592 = vsyncadd [#allocation5], 4294966784 }
  0x4b   :  { %593 = dma.done.wait [#allocation8], 272  }
  0x4c   :  { %594 = vsyncadd [#allocation8], 4294967024 }
  0x4d   :  { %595 = dma.done.wait [#allocation11], 16  }
  0x4e   :  { %596 = vsyncadd [#allocation11], 4294967280  ;;  %v607_v0 = vmov 0.0   ;;  %vm608_vm0 = vmmov 0   ;;  %v462_v1 = vld [vmem:[%s706_s1] sm:$0xff]   ;;  %vm128_vm1 = vcmask 130048  }
  0x4f   :  { %420 = vmatprep.subr.bf16.mxu0 %v607_v0  ;;  %422 = vmatprep.mubr.msk.bf16.mxu0 %vm608_vm0, %v607_v0  ;;  %v111_v2 = vld [vmem:[#allocation2] sm:$0xff]  ;;  %v463_v4 = vld [vmem:[#allocation4 + $0x8] sm:$0xff]   ;;  %v464_v5 = vld [vmem:[#allocation4] sm:$0xff]   ;;  %vm199_vm3 = vcmask 261120  }
  0x50   :  { %426 = vmatprep.subr.bf16.mxu1 %v607_v0  ;;  %430 = vmatprep.mubr.msk.bf16.mxu1 %vm608_vm0, %v607_v0  ;;  %v115_v3 = vpack.c.bf16 %v111_v2, %v111_v2  ;;  %v394_v6 = vld [vmem:[%s707_s2] ss:$0 sm:$0xff]  ;;  %v466_v16 = vld [vmem:[#allocation6] sm:$0xff]   ;;  %v468_v28 = vld [vmem:[#allocation9] sm:$0xff]  }
  0x51   :  { %421 = vmatpush3.bf16.msra.mxu0 %v462_v1  ;;  %427 = vmatpush3.bf16.msra.mxu1 %v463_v4  ;;  %v465_v15 = vld [vmem:[#allocation6 + $0x8] sm:$0xff]   ;;  %v467_v27 = vld [vmem:[#allocation9 + $0x8] sm:$0xff]   ;;  %v401_v29 = vld [vmem:[#allocation7] ss:$0 sm:$0xff] }
  0x52   :  { %434 = vmatprep.subr.bf16.mxu0 %v607_v0  ;;  %428 = vmatprep.subr.bf16.mxu1 %v607_v0  ;;  %v397_v17 = vld [vmem:[%s709_s4] ss:$0 sm:$0xff]  ;;  %v405_v39 = vld [vmem:[#allocation10] ss:$0 sm:$0xff] }
  0x54   :  { %423 = vmatmul.mubr.msk.bf16.vlgmr.msra.gmra.mxu0 %vm128_vm1, %v115_v3 }
  0x55   :  { %438 = vmatprep.mubr.msk.bf16.mxu0 %vm608_vm0, %v607_v0  ;;  %429 = vmatpush3.bf16.msra.mxu1 %v464_v5 }
  0x56   :  { %442 = vmatprep.subr.bf16.mxu1 %v607_v0  ;;  %435 = vmatpush3.bf16.msra.mxu0 %v465_v15 }
  0x57   :  { %436 = vmatprep.subr.bf16.mxu0 %v607_v0 }
  0x5a   :  { %437 = vmatpush3.bf16.msra.mxu0 %v466_v16 }
 0x114   :  { %v166_v7 = vpop.f32.mrf.mxu0 }
 0x115   :  { %v167_v8 = vadd.f32 %v394_v6, %v166_v7 }
 0x116   :  { %v424_v9 = vpop.f32.mrf.mxu0 }
 0x117   :  { %vm172_vm2 = vcmp.ge.f32.partialorder %v167_v8, 0.0  ;;  %v173_v10 = vmul.f32 0.2, %v167_v8 }
 0x118   :  { %v169_v11 = vpop.f32.mrf.mxu0 }
 0x119   :  { %v174_v12 = vsel %vm172_vm2, %v167_v8, %v173_v10 }
 0x11a   :  { %v180_v13 = vpack.c.bf16 %v174_v12, %v174_v12  ;;  %v425_v14 = vpop.f32.mrf.mxu0 }
 0x11c   :  { %431 = vmatmul.mubr.msk.bf16.vlgmr.msra.gmra.mxu1 %vm199_vm3, %v180_v13 }
 0x11d   :  { %446 = vmatprep.mubr.msk.bf16.mxu1 %vm608_vm0, %v607_v0  ;;  %443 = vmatpush3.bf16.msra.mxu1 %v467_v27 }
 0x11e   :  { %444 = vmatprep.subr.bf16.mxu1 %v607_v0 }
 0x121   :  { %445 = vmatpush3.bf16.msra.mxu1 %v468_v28 }
 0x1dc   :  { %v237_v18 = vpop.f32.mrf.mxu1 }
 0x1dd   :  { %v238_v19 = vadd.f32 %v397_v17, %v237_v18 }
 0x1de   :  { %v432_v20 = vpop.f32.mrf.mxu1 }
 0x1df   :  { %vm243_vm4 = vcmp.ge.f32.partialorder %v238_v19, 0.0  ;;  %v244_v21 = vmul.f32 0.2, %v238_v19 }
 0x1e0   :  { %v240_v22 = vpop.f32.mrf.mxu1 }
 0x1e1   :  { %v245_v23 = vsel %vm243_vm4, %v238_v19, %v244_v21 }
 0x1e2   :  { %v246_v24 = vadd.f32 %v245_v23, %v174_v12  ;;  %v433_v25 = vpop.f32.mrf.mxu1 }
 0x1e4   :  { %v252_v26 = vpack.c.bf16 %v246_v24, %v246_v24 }
 0x1e6   :  { %439 = vmatmul.mubr.msk.bf16.vlgmr.msra.gmra.mxu0 %vm199_vm3, %v252_v26 }
 0x2a6   :  { %v308_v30 = vpop.f32.mrf.mxu0 }
 0x2a7   :  { %v309_v31 = vadd.f32 %v401_v29, %v308_v30 }
 0x2a8   :  { %v440_v32 = vpop.f32.mrf.mxu0 }
 0x2a9   :  { %v314_v33 = vadd.f32 %v309_v31, %v246_v24 }
 0x2aa   :  { %v311_v34 = vpop.f32.mrf.mxu0 }
 0x2ab   :  { %vm315_vm5 = vcmp.ge.f32.partialorder %v314_v33, 0.0  ;;  %v316_v35 = vmul.f32 0.2, %v314_v33 }
 0x2ac   :  { %v441_v36 = vpop.f32.mrf.mxu0 }
 0x2ad   :  { %v317_v37 = vsel %vm315_vm5, %v314_v33, %v316_v35 }
 0x2ae   :  { %v318_v38 = vpack.c.bf16 %v317_v37, %v317_v37 }
 0x2b0   :  { %447 = vmatmul.mubr.msk.bf16.vlgmr.msra.gmra.mxu1 %vm199_vm3, %v318_v38 }
 0x370   :  { %v379_v40 = vpop.f32.mrf.mxu1 }
 0x371   :  { %v380_v41 = vadd.f32 %v405_v39, %v379_v40 }
 0x372   :  { %v448_v42 = vpop.f32.mrf.mxu1 }
 0x373   :  { %385 = vst [vmem:[%s714_s9] sm:$0xff] %v380_v41 }
 0x374   :  { %v382_v43 = vpop.f32.mrf.mxu1 }
 0x376   :  { %v449_v44 = vpop.f32.mrf.mxu1 }
 0x377   :  { %390 = vsyncpa [#allocation3], 1 }
 0x378   :  { %391 = vsyncpa [#allocation5], 1 }
 0x379   :  { %392 = vsyncpa [#allocation8], 1 }
 0x37a   :  { %393 = vsyncpa [#allocation11], 1 }

</bundles_post_ra>
